<compile_context>
chip_gen: v7x
topology: tpu7x:2x2x1
jax: 0.10.0
libtpu: 0.0.40
codegen_flags: <defaults>
</compile_context>

<pallas_src>
import functools

import jax
import jax.numpy as jnp
from jax.experimental import pallas as pl
from jax.experimental.pallas import tpu as pltpu

_NEG_CLAMP = -100.0      # torch.nn.BCELoss clamps log terms at -100.
_MAX_TILE_B = 2048       # beyond this the roofline gain is ~0 (85% -> 86%).
_VMEM_CAP_CACHE = None


def _vmem_capacity_bytes():
    """Physical VMEM capacity (per TensorCore), queried once outside jit."""
    global _VMEM_CAP_CACHE
    if _VMEM_CAP_CACHE is None:
        cap = None
        try:
            cap = int(pltpu.get_tpu_info().vmem_capacity_bytes)
        except Exception:
            cap = None
        if not cap or cap <= 0:
            cap = 64 << 20   # conservative: v7x has 64 MiB per TensorCore
        _VMEM_CAP_CACHE = cap
    return _VMEM_CAP_CACHE


def _sublane_multiple(itemsize):
    # dtype packing along sublanes: f32 -> 8, bf16 -> 16, int8/fp8 -> 32
    return {4: 8, 2: 16}.get(itemsize, 32)


def _pick_tile(batch, hidden, itemsize, vmem_limit, max_tile_b=None):
    """Largest batch tile whose (TB, H) stream fits the VMEM budget."""
    sub = _sublane_multiple(itemsize)
    # Budget ~3 live copies of the tile (2 pipeline buffers + one possible
    # transposed copy from the MXU feed) within ~85% of the scoped limit.
    per_copy = int(vmem_limit * 0.85) // 3
    tb_cap = per_copy // max(1, hidden * itemsize)
    tb_cap = (tb_cap // sub) * sub
    tb_cap = max(sub, min(_MAX_TILE_B, tb_cap))
    if max_tile_b is not None:
        tb_cap = max(sub, min(tb_cap, (max_tile_b // sub) * sub))
    if batch <= tb_cap:
        return max(sub, ((batch + sub - 1) // sub) * sub)  # single tile
    return tb_cap


def _logits_row(x, w, b):
    """(1, H) . (TB, H)^T -> (1, TB) lane-dense f32 logits row on the MXU."""
    z = jax.lax.dot_general(
        w, x,
        dimension_numbers=(((1,), (1,)), ((), ())),   # contract both last dims
        preferred_element_type=jnp.float32,
    )
    return z + b  # scalar bias (SMEM) broadcast


def _disc_pred_kernel(x_ref, w_ref, b_ref, pred_ref):
    # x_ref: (TB, H) native dtype, w_ref: (1, H), b_ref: (1,) SMEM scalar
    z = _logits_row(x_ref[...], w_ref[...], b_ref[0])
    pred_ref[0] = jax.nn.sigmoid(z).astype(pred_ref.dtype)      # (1, TB) row


def _disc_loss_kernel(x_ref, w_ref, b_ref, t_ref, pred_ref, bce_ref, *,
                      batch, tile_b):
    i = pl.program_id(0)

    z = _logits_row(x_ref[...], w_ref[...], b_ref[0])            # (1, TB) f32
    p = jax.nn.sigmoid(z)
    pred_ref[0] = p.astype(pred_ref.dtype)

    # BCE from logits via stable log-sigmoid (all VPU/EUP, no XLU):
    #   log p     = min(z, 0) - log1p(exp(-|z|))
    #   log (1-p) = -max(z, 0) - log1p(exp(-|z|))
    t = t_ref[0].astype(jnp.float32)                              # (1, TB)
    sp = jnp.log1p(jnp.exp(-jnp.abs(z)))
    log_p = jnp.maximum(jnp.minimum(z, 0.0) - sp, _NEG_CLAMP)
    log_1mp = jnp.maximum(-jnp.maximum(z, 0.0) - sp, _NEG_CLAMP)
    bce = -(t * log_p + (1.0 - t) * log_1mp)

    # Zero contributions from rows that only exist due to batch padding.
    col = jax.lax.broadcasted_iota(jnp.int32, (1, tile_b), 1)
    valid = (i * tile_b + col) < batch
    bce_ref[0] = jnp.where(valid, bce, 0.0)                       # (1, TB) row


@functools.partial(jax.jit, static_argnames=("with_loss", "tile_b", "vmem_limit"))
def _run(first_hiddens, weight, bias, target_tfs, with_loss, tile_b, vmem_limit):
    B, H = first_hiddens.shape
    TB = tile_b
    NT = pl.cdiv(B, TB)
    B_pad = NT * TB

    x = first_hiddens
    if B_pad != B:
        x = jnp.pad(x, ((0, B_pad - B), (0, 0)))
    w = weight.reshape(1, H).astype(x.dtype)      # native dtype into the MXU
    b = bias.reshape(1).astype(jnp.float32)       # scalar -> SMEM

    x_spec = pl.BlockSpec((TB, H), lambda i: (i, 0))
    w_spec = pl.BlockSpec((1, H), lambda i: (0, 0))              # VMEM-resident
    b_spec = pl.BlockSpec(memory_space=pltpu.MemorySpace.SMEM)
    row_spec = pl.BlockSpec((1, 1, TB), lambda i: (i, 0, 0))     # lane-dense rows

    pred_shape = jax.ShapeDtypeStruct((NT, 1, TB), jnp.float32)
    itemsize = jnp.dtype(x.dtype).itemsize
    cost = pl.CostEstimate(
        flops=2 * B_pad * H,
        transcendentals=(3 if with_loss else 1) * B_pad,
        bytes_accessed=B_pad * H * itemsize
        + (12 if with_loss else 4) * B_pad + 4 * H,
    )
    cparams = pltpu.CompilerParams(
        dimension_semantics=("parallel",),        # fully parallel batch tiles
        vmem_limit_bytes=vmem_limit,
    )

    if with_loss:
        t = target_tfs.astype(jnp.float32)
        if B_pad != B:
            t = jnp.pad(t, (0, B_pad - B))
        t = t.reshape(NT, 1, TB)
        kern = functools.partial(_disc_loss_kernel, batch=B, tile_b=TB)
        preds, bce = pl.pallas_call(
            kern,
            grid=(NT,),
            out_shape=(pred_shape, jax.ShapeDtypeStruct((NT, 1, TB), jnp.float32)),
            in_specs=[x_spec, w_spec, b_spec, row_spec],
            out_specs=(row_spec, row_spec),
            compiler_params=cparams,
            cost_estimate=cost,
        )(x, w, b, t)
        loss = jnp.sum(bce) * (1.0 / B)           # tiny final reduce in XLA
        return preds.reshape(B_pad)[:B], loss
    else:
        preds = pl.pallas_call(
            _disc_pred_kernel,
            grid=(NT,),
            out_shape=pred_shape,
            in_specs=[x_spec, w_spec, b_spec],
            out_specs=row_spec,
            compiler_params=cparams,
            cost_estimate=cost,
        )(x, w, b)
        return preds.reshape(B_pad)[:B], None


class Discriminator:
    """JAX/Pallas port of the PyTorch Discriminator (Linear(H,1) + Sigmoid + BCE)."""

    def __init__(self, hidden_size: int, sent_emb: bool = False, key=None,
                 max_tile_b: int | None = None):
        self.sent_emb = sent_emb
        self.hidden_size = hidden_size
        self._max_tile_b = max_tile_b   # test hook: force multi-tile grids
        if key is None:
            key = jax.random.PRNGKey(0)
        k_w, k_b = jax.random.split(key)
        bound = 1.0 / (hidden_size ** 0.5)  # nn.Linear default init range
        self.weight = jax.random.uniform(
            k_w, (1, hidden_size), jnp.float32, minval=-bound, maxval=bound)
        self.bias = jax.random.uniform(
            k_b, (1,), jnp.float32, minval=-bound, maxval=bound)

    def __call__(self, first_hiddens, target_tfs=None):
        with_loss = target_tfs is not None
        B, H = first_hiddens.shape
        itemsize = jnp.dtype(first_hiddens.dtype).itemsize
        # Generation-aware scoped-VMEM request: half of physical, <= 64 MiB
        # (v7x: 32 of 64 MiB; v5e/v6e: 64 of 128 MiB).
        vmem_limit = int(min(_vmem_capacity_bytes() // 2, 64 << 20))
        tile_b = _pick_tile(B, H, itemsize, vmem_limit, self._max_tile_b)
        dummy = target_tfs if with_loss else jnp.zeros((B,), jnp.float32)
        preds, loss = _run(first_hiddens, self.weight, self.bias, dummy,
                           with_loss, tile_b, vmem_limit)
        return preds, (loss if with_loss else None)


def _ref_forward(disc, x, t):
    p = jax.nn.sigmoid(x @ disc.weight.T + disc.bias)[:, 0]
    loss = jnp.mean(-(t * jnp.log(p) + (1.0 - t) * jnp.log(1.0 - p)))
    return p, loss


if __name__ == "__main__":
    key = jax.random.PRNGKey(0)
    k_x, k_t, k_p = jax.random.split(key, 3)

    # Small single-tile case (matches the module's natural shapes).
    B, H = 8, 32
    first_hiddens = jax.random.normal(k_x, (B, H), jnp.float32)
    target_tfs = (jax.random.uniform(k_t, (B,)) > 0.5).astype(jnp.float32)

    disc = Discriminator(hidden_size=H, key=k_p)

    preds, loss = disc(first_hiddens, target_tfs)
    preds = jax.block_until_ready(preds)
    loss = jax.block_until_ready(loss)

    preds_only, no_loss = disc(first_hiddens, None)
    preds_only = jax.block_until_ready(preds_only)

    ref_p, ref_loss = _ref_forward(disc, first_hiddens, target_tfs)
    assert preds.shape == (B,)
    assert jnp.allclose(preds, ref_p, atol=1e-5), "pred mismatch"
    assert jnp.allclose(preds_only, ref_p, atol=1e-5), "pred mismatch (no-loss path)"
    assert jnp.allclose(loss, ref_loss, atol=1e-5), "loss mismatch"
    assert no_loss is None

    # Multi-tile case with padding in the last tile (exercises the parallel
    # per-tile BCE partials, the padded-row mask and the wrapper-side sum).
    # max_tile_b forces NT > 1 at small test shapes.
    B2, H2 = 300, 128
    x2 = jax.random.normal(jax.random.PRNGKey(1), (B2, H2), jnp.float32)
    t2 = (jax.random.uniform(jax.random.PRNGKey(2), (B2,)) > 0.5).astype(jnp.float32)
    disc2 = Discriminator(hidden_size=H2, key=jax.random.PRNGKey(3), max_tile_b=128)
    p2, l2 = disc2(x2, t2)
    (p2, l2) = jax.block_until_ready((p2, l2))
    ref_p2, ref_l2 = _ref_forward(disc2, x2, t2)
    assert p2.shape == (B2,)
    assert jnp.allclose(p2, ref_p2, atol=1e-5), "pred mismatch (tiled)"
    assert jnp.allclose(l2, ref_l2, atol=1e-5), "loss mismatch (tiled)"

    p2_only, _ = disc2(x2, None)
    p2_only = jax.block_until_ready(p2_only)
    assert jnp.allclose(p2_only, ref_p2, atol=1e-5), "pred mismatch (tiled, no-loss)"

    print("KERNEL_OK")
</pallas_src>

<mosaic_0001>
module attributes {stable_mosaic.version = 11 : i64} {
  func.func @_disc_loss_kernel(%arg0: i32, %arg1: memref<8x32xf32, #tpu.memory_space<vmem>>, %arg2: memref<1x32xf32, #tpu.memory_space<vmem>>, %arg3: memref<1xf32, #tpu.memory_space<smem>>, %arg4: memref<1x1x8xf32, #tpu.memory_space<vmem>>, %arg5: memref<1x1x8xf32, #tpu.memory_space<vmem>>, %arg6: memref<1x1x8xf32, #tpu.memory_space<vmem>>) attributes {dimension_semantics = [#tpu.dimension_semantics<parallel>], iteration_bounds = array<i64: 1>, scalar_prefetch = 0 : i64, scratch_operands = 0 : i64, tpu.core_type = #tpu.core_type<tc>, window_params = [{transform_indices = @transform_0, window_bounds = array<i64: 8, 32>}, {pipeline_mode = #tpu.pipeline_mode<synchronous>, transform_indices = @transform_1, window_bounds = array<i64: 1, 32>}, {transform_indices = @transform_2, window_bounds = array<i64: 1>}, {transform_indices = @transform_3, window_bounds = array<i64: 1, 1, 8>}, {transform_indices = @transform_4, window_bounds = array<i64: 1, 1, 8>}, {transform_indices = @transform_5, window_bounds = array<i64: 1, 1, 8>}]} {
    %c0 = arith.constant 0 : index
    %c0_0 = arith.constant 0 : index
    %0 = vector.load %arg1[%c0, %c0_0] : memref<8x32xf32, #tpu.memory_space<vmem>>, vector<8x32xf32>
    %c0_1 = arith.constant 0 : index
    %c0_2 = arith.constant 0 : index
    %1 = vector.load %arg2[%c0_1, %c0_2] : memref<1x32xf32, #tpu.memory_space<vmem>>, vector<1x32xf32>
    %c0_3 = arith.constant 0 : index
    %2 = memref.load %arg3[%c0_3] : memref<1xf32, #tpu.memory_space<smem>>
    %cst = arith.constant dense<0.000000e+00> : vector<1x8xf32>
    %3 = tpu.matmul %1, %0, %cst {dimension_numbers = #tpu.dot_dimension_numbers<[1], [1], [0], [0], [0, 0, 1, 0], [], []>} : vector<1x32xf32>, vector<8x32xf32>, vector<1x8xf32> -> vector<1x8xf32>
    %4 = vector.broadcast %2 : f32 to vector<1x8xf32>
    %5 = arith.addf %3, %4 : vector<1x8xf32>
    %6 = arith.negf %5 : vector<1x8xf32>
    %7 = math.exp %6 : vector<1x8xf32>
    %cst_4 = arith.constant 1.000000e+00 : f32
    %8 = vector.broadcast %cst_4 : f32 to vector<1x8xf32>
    %9 = arith.addf %8, %7 : vector<1x8xf32>
    %10 = arith.divf %8, %9 : vector<1x8xf32>
    %c0_5 = arith.constant 0 : index
    %c0_6 = arith.constant 0 : index
    %c0_7 = arith.constant 0 : index
    %11 = vector.load %arg5[%c0_5, %c0_6, %c0_7] : memref<1x1x8xf32, #tpu.memory_space<vmem>>, vector<1x1x8xf32>
    %12 = vector.shape_cast %11 : vector<1x1x8xf32> to vector<1x8xf32>
    %13 = vector.shape_cast %10 : vector<1x8xf32> to vector<1x1x8xf32>
    tpu.vector_store %arg5[%c0_5, %c0_6, %c0_7], %13 {strides = array<i32>} : memref<1x1x8xf32, #tpu.memory_space<vmem>>, vector<1x1x8xf32>,
    %c0_8 = arith.constant 0 : index
    %c0_9 = arith.constant 0 : index
    %c0_10 = arith.constant 0 : index
    %14 = vector.load %arg4[%c0_8, %c0_9, %c0_10] : memref<1x1x8xf32, #tpu.memory_space<vmem>>, vector<1x1x8xf32>
    %15 = vector.shape_cast %14 : vector<1x1x8xf32> to vector<1x8xf32>
    %16 = math.absf %5 : vector<1x8xf32>
    %cst_11 = arith.constant 0.000000e+00 : f32
    %17 = vector.broadcast %cst_11 : f32 to vector<1x8xf32>
    %18 = arith.subf %17, %16 : vector<1x8xf32>
    %19 = math.exp %18 : vector<1x8xf32>
    %20 = math.log1p %19 : vector<1x8xf32>
    %cst_12 = arith.constant 0.000000e+00 : f32
    %21 = vector.broadcast %cst_12 : f32 to vector<1x8xf32>
    %22 = arith.minimumf %5, %21 : vector<1x8xf32>
    %23 = arith.subf %22, %20 : vector<1x8xf32>
    %cst_13 = arith.constant -1.000000e+02 : f32
    %24 = vector.broadcast %cst_13 : f32 to vector<1x8xf32>
    %25 = arith.maximumf %23, %24 : vector<1x8xf32>
    %cst_14 = arith.constant 0.000000e+00 : f32
    %26 = vector.broadcast %cst_14 : f32 to vector<1x8xf32>
    %27 = arith.maximumf %5, %26 : vector<1x8xf32>
    %cst_15 = arith.constant 0.000000e+00 : f32
    %28 = vector.broadcast %cst_15 : f32 to vector<1x8xf32>
    %29 = arith.subf %28, %27 : vector<1x8xf32>
    %30 = arith.subf %29, %20 : vector<1x8xf32>
    %cst_16 = arith.constant -1.000000e+02 : f32
    %31 = vector.broadcast %cst_16 : f32 to vector<1x8xf32>
    %32 = arith.maximumf %30, %31 : vector<1x8xf32>
    %33 = arith.mulf %15, %25 : vector<1x8xf32>
    %cst_17 = arith.constant 1.000000e+00 : f32
    %34 = vector.broadcast %cst_17 : f32 to vector<1x8xf32>
    %35 = arith.subf %34, %15 : vector<1x8xf32>
    %36 = arith.mulf %35, %32 : vector<1x8xf32>
    %37 = arith.addf %33, %36 : vector<1x8xf32>
    %cst_18 = arith.constant 0.000000e+00 : f32
    %38 = vector.broadcast %cst_18 : f32 to vector<1x8xf32>
    %39 = arith.subf %38, %37 : vector<1x8xf32>
    %40 = tpu.iota {dimensions = array<i32: 1>} : vector<1x8xi32>
    %c8_i32 = arith.constant 8 : i32
    %41 = arith.muli %arg0, %c8_i32 : i32
    %42 = vector.broadcast %41 : i32 to vector<1x8xi32>
    %43 = arith.addi %42, %40 : vector<1x8xi32>
    %c8_i32_19 = arith.constant 8 : i32
    %44 = vector.broadcast %c8_i32_19 : i32 to vector<1x8xi32>
    %45 = arith.cmpi slt, %43, %44 : vector<1x8xi32>
    %cst_20 = arith.constant 0.000000e+00 : f32
    %46 = vector.broadcast %cst_20 : f32 to vector<1x8xf32>
    %47 = arith.select %45, %39, %46 : vector<1x8xi1>, vector<1x8xf32>
    %c0_21 = arith.constant 0 : index
    %c0_22 = arith.constant 0 : index
    %c0_23 = arith.constant 0 : index
    %48 = vector.load %arg6[%c0_21, %c0_22, %c0_23] : memref<1x1x8xf32, #tpu.memory_space<vmem>>, vector<1x1x8xf32>
    %49 = vector.shape_cast %48 : vector<1x1x8xf32> to vector<1x8xf32>
    %50 = vector.shape_cast %47 : vector<1x8xf32> to vector<1x1x8xf32>
    tpu.vector_store %arg6[%c0_21, %c0_22, %c0_23], %50 {strides = array<i32>} : memref<1x1x8xf32, #tpu.memory_space<vmem>>, vector<1x1x8xf32>,
    return
  }
  func.func @transform_0(%arg0: i32) -> (i32, i32) {
    %c0_i32 = arith.constant 0 : i32
    %c0_i32_0 = arith.constant 0 : i32
    return %arg0, %c0_i32 : i32, i32
  }
  func.func @transform_1(%arg0: i32) -> (i32, i32) {
    %c0_i32 = arith.constant 0 : i32
    %c0_i32_0 = arith.constant 0 : i32
    %c0_i32_1 = arith.constant 0 : i32
    return %c0_i32, %c0_i32_0 : i32, i32
  }
  func.func @transform_2(%arg0: i32) -> i32 {
    %c0_i32 = arith.constant 0 : i32
    %c0_i32_0 = arith.constant 0 : i32
    return %c0_i32 : i32
  }
  func.func @transform_3(%arg0: i32) -> (i32, i32, i32) {
    %c0_i32 = arith.constant 0 : i32
    %c0_i32_0 = arith.constant 0 : i32
    %c0_i32_1 = arith.constant 0 : i32
    return %arg0, %c0_i32, %c0_i32_0 : i32, i32, i32
  }
  func.func @transform_4(%arg0: i32) -> (i32, i32, i32) {
    %c0_i32 = arith.constant 0 : i32
    %c0_i32_0 = arith.constant 0 : i32
    %c0_i32_1 = arith.constant 0 : i32
    return %arg0, %c0_i32, %c0_i32_0 : i32, i32, i32
  }
  func.func @transform_5(%arg0: i32) -> (i32, i32, i32) {
    %c0_i32 = arith.constant 0 : i32
    %c0_i32_0 = arith.constant 0 : i32
    %c0_i32_1 = arith.constant 0 : i32
    return %arg0, %c0_i32, %c0_i32_0 : i32, i32, i32
  }
}

</mosaic_0001>

<bundles_post_ra>
// kernel: _run.1
= control target key start
LH: loop header
LB: loop body
LE: loop exit
PB: predicated region body
PF: predicated region fallthrough
CT: control target
= control target key end

     0   :  { %12 = vsyncpa [#allocation4], 0  ;;  %s317_s0 = inlined_call_operand.hbm [shape: f32[8,32], index: 0, kind: input, shape index: {}]   ;;  %s318_s1 = inlined_call_operand.vmem [shape: f32[1,32], index: 1, kind: input, shape index: {}]   ;;  %s319_s2 = inlined_call_operand.<no memory space> [shape: f32[1], index: 2, kind: input, shape index: {}]   ;;  %s320_s3 = inlined_call_operand.vmem [shape: f32[1,1,8], index: 3, kind: input, shape index: {}]   ;;  %s321_s4 = inlined_call_operand.hbm [shape: f32[1,1,8], index: 4, kind: output, shape index: {0}]   ;;  %s322_s5 = inlined_call_operand.vmem [shape: f32[1,1,8], index: 5, kind: output, shape index: {1}]  }
   0x1   :  { %13 = vsyncpa [#allocation5], 0  ;;  %s245_s18 = smov [#allocation3]   ;;  %s197_s22 = scalar_lea.hbm %s317_s0, 128 }
   0x2   :  { %s20_s19 = sshll.u32 %s245_s18, 4  ;;  %p198_p0 = scmp.ne.s32.totalorder %s317_s0, %s197_s22  ;;  %s21_s19 = int_to_ptr.vmem [resolvable:$true] %s20_s19 }
   0x3   :  { %p201_p1 = scmp.lt.u32.totalorder %s197_s22, %s317_s0 }
   0x5   :  { %p203_p2 = pnand %p201_p1, %p198_p0 }
   0x7   :  { %206 = shalt.err (!%p203_p2)
}
   0x8   :  { %s207_s27 = scalar_lea.vmem %s21_s19, 128  ;;  %p212_p4 = scmp.lt.s32.totalorder %s21_s19, %s21_s19 }
   0x9   :  { %p208_p3 = scmp.ne.s32.totalorder %s21_s19, %s207_s27  ;;  %p213_p5 = scmp.lt.s32.totalorder %s207_s27, %s207_s27 }
   0xb   :  { %p214_p6 = por %p213_p5, %p212_p4 }
   0xd   :  { %p215_p7 = pnand %p214_p6, %p208_p3 }
   0xf   :  { %218 = shalt.err (!%p215_p7)
}
  0x10   :  { %23 = dma.hbm_to_vmem [thread:$0]  %s317_s0, 128, %s21_s19, [#allocation4]  }
  0x11   :  { %241 = dma.done.wait [#allocation4], 128  }
  0x12   :  { %242 = vsyncadd [#allocation4], 4294967168  ;;  %v246_v0 = vmov 0.0   ;;  %vm247_vm0 = vmmov 0   ;;  %vm37_vm1 = vcmask 261120   ;;  %v33_v1 = vld [vmem:[#allocation3] sm:$0xff]  ;;  %v36_v3 = vstv %s319_s2 }
  0x13   :  { %180 = vmatprep.subr.mxu0 %v246_v0  ;;  %182 = vmatprep.mubr.msk.f32.mxu0 %vm247_vm0, %v246_v0  ;;  %v34_v2 = vld [vmem:[%s318_s1] sm:$0x1]  ;;  %s248_s0 = smov [#allocation6]   ;;  %vm120_vm2 = vcmask 57344  }
  0x14   :  { %181 = vmatpush3.xpose.msk.msra.mxu0 %vm37_vm1, %v33_v1  ;;  %s162_s1 = sshll.u32 %s248_s0, 4  ;;  %s163_s1 = int_to_ptr.vmem [resolvable:$true] %s162_s1 }
  0x15   :  { %s219_s2 = scalar_lea.vmem %s163_s1, 16  ;;  %s223_s9 = scalar_lea.vmem %s163_s1, 32 }
  0x16   :  { %p220_p8 = scmp.ne.s32.totalorder %s163_s1, %s219_s2  ;;  %p224_p9 = scmp.lt.s32.totalorder %s163_s1, %s163_s1 }
  0x17   :  { %183 = vmatmul.mubr.msk.f32.vlgmr.msra.gmra.mrb[0].mxu0 %vm37_vm1, %v34_v2  ;;  %p225_p10 = scmp.lt.s32.totalorder %s223_s9, %s219_s2 }
  0x19   :  { %p226_p11 = por %p225_p10, %p224_p9 }
  0x1b   :  { %p227_p12 = pnand %p226_p11, %p220_p8 }
  0xea   :  { %v110_v4 = vpop.f32.mrb[0].mxu0 }
  0xeb   :  { %v111_v5 = vadd.f32 %v110_v4, %v36_v3  ;;  %v184_v6 = vpop.f32.mrb[1].mxu0 }
  0xed   :  { %v177_v7 = vmul.f32 -1.442695, %v111_v5  ;;  %v123_v8 = vand.u32 2147483647, %v111_v5  ;;  %v139_v19 = vmax.f32 %v111_v5, 0.0 }
  0xef   :  { %189 = vpow2.f32 %v177_v7  ;;  %v124_v9 = vsub.f32 0.0, %v123_v8 }
  0xf1   :  { %v125_v10 = vmul.f32 1.442695, %v124_v9 }
  0xf3   :  { %191 = vpow2.f32 %v125_v10 }
  0xf9   :  { %v190_v11 = vpop.eup %189 }
  0xfa   :  { %v117_v12 = vadd.f32 1.0, %v190_v11 }
  0xfc   :  { %193 = vrcp.f32 %v117_v12 }
  0xfd   :  { %v192_v13 = vpop.eup %191 }
  0xfe   :  { %v127_v14 = vadd.f32 1.0, %v192_v13  ;;  %v130_v15 = vmul.f32 -0.5, %v192_v13  ;;  %v133_v18 = vand.u32 2147483647, %v192_v13 }
 0x100   :  { %195 = vlog2.f32 %v127_v14  ;;  %v131_v17 = vadd.f32 1.0, %v130_v15 }
 0x106   :  { %v194_v16 = vpop.eup %193 }
 0x107   :  { %121 = vst.msk [vmem:[#allocation6] sm:$0x1] %vm120_vm2, %v194_v16 }
 0x108   :  { %230 = shalt.err (!%p227_p12)
}
 0x109   :  { %s231_s12 = scalar_lea.hbm %s321_s4, 16 }
 0x10a   :  { %p232_p13 = scmp.ne.s32.totalorder %s321_s4, %s231_s12  ;;  %p235_p0 = scmp.lt.u32.totalorder %s231_s12, %s321_s4 }
 0x10c   :  { %p237_p1 = pnand %p235_p0, %p232_p13 }
 0x10e   :  { %240 = shalt.err (!%p237_p1)
}
 0x10f   :  { %165 = dma.vmem_to_hbm [thread:$0]  %s163_s1, 16, %s321_s4, [#allocation5]   ;;  %v196_v20 = vpop.eup %195  ;;  %v132_v22 = vmul.f32 %v192_v13, %v131_v17  ;;  %v122_v23 = vld [vmem:[%s320_s3] sm:$0x1]  ;;  %vm134_vm3 = vcmp.lt.f32.partialorder %v133_v18, 0.0004427343  ;;  %v148_v27 = vlaneseq }
 0x110   :  { %v129_v21 = vmul.f32 0.6931472, %v196_v20  ;;  %v136_v24 = vmin.f32 %v111_v5, 0.0  ;;  %v140_v25 = vsub.f32 0.0, %v139_v19  ;;  %v144_v30 = vsub.f32 1.0, %v122_v23 }
 0x111   :  { %v149_v33 = vand.u32 127, %v148_v27 }
 0x112   :  { %v135_v26 = vsel %vm134_vm3, %v132_v22, %v129_v21 }
 0x113   :  { %v137_v28 = vsub.f32 %v136_v24, %v135_v26  ;;  %v141_v29 = vsub.f32 %v140_v25, %v135_v26  ;;  %vm153_vm4 = vcmp.lt.s32.totalorder %v149_v33, 8 }
 0x115   :  { %v138_v31 = vmax.f32 %v137_v28, -100.0  ;;  %v142_v32 = vmax.f32 %v141_v29, -100.0 }
 0x117   :  { %v143_v34 = vmul.f32 %v138_v31, %v122_v23  ;;  %v145_v35 = vmul.f32 %v144_v30, %v142_v32 }
 0x119   :  { %v146_v36 = vadd.f32 %v145_v35, %v143_v34 }
 0x11b   :  { %v147_v37 = vsub.f32 0.0, %v146_v36 }
 0x11d   :  { %v154_v38 = vsel %vm153_vm4, %v147_v37, 0.0 }
 0x11e   :  { %155 = vst.msk [vmem:[%s322_s5] sm:$0x1] %vm120_vm2, %v154_v38 }
 0x11f   :  { %243 = dma.done.wait [#allocation5], 16  }
 0x120   :  { %244 = vsyncadd [#allocation5], 4294967280 }
 0x121   :  { %173 = vsyncpa [#allocation4], 1 }
 0x122   :  { %174 = vsyncpa [#allocation5], 1 }

</bundles_post_ra>
